<compile_context>
chip_gen: v5e
topology: v5e:2x2
jax: 0.10.0
libtpu: 0.0.40
codegen_flags: <defaults>
</compile_context>

<pallas_src>
import jax
import jax.numpy as jnp
from jax.experimental import pallas as pl
from jax.experimental.pallas import tpu as pltpu

_LANES = 128


def _make_kernel(num_classes):
    sentinel = num_classes  # labels merged to this value are ignored / padding

    def kernel(recon_ref, lab_ref, sum_ref, cnt_ref):
        t = pl.program_id(1)

        @pl.when(t == 0)
        def _():
            sum_ref[...] = jnp.zeros_like(sum_ref)
            cnt_ref[...] = jnp.zeros_like(cnt_ref)

        lab = lab_ref[0, 0]                       # (row_tile, 128) int32
        valid = lab != sentinel

        # Per-pixel channel gather via one-hot compare+select (VPU only).
        gathered = jnp.zeros(lab.shape, jnp.float32)
        for c in range(num_classes):
            gathered = jnp.where(lab == c,
                                 recon_ref[0, c].astype(jnp.float32),
                                 gathered)

        safe = jnp.where(valid, gathered, 1.0)    # keep log() finite on ignored px
        sum_ref[0] = sum_ref[0] + jnp.where(valid, -jnp.log(safe), 0.0)
        cnt_ref[0] = cnt_ref[0] + valid.astype(jnp.float32)

    return kernel


def loss_without_softmax(recon_label3, label, invisible_p=None,
                         loss_weight=1.0, ignore_label=255):
    """JAX/Pallas equivalent of LossWithoutSoftmax.forward (NCHW inputs)."""
    B, C, H, W = recon_label3.shape
    assert label.shape == (B, 1, H, W)
    HW = H * W

    recon = recon_label3.reshape(B, C, HW)
    lab = label.reshape(B, HW).astype(jnp.int32)

    # Build the ignore mask and merge it into the label as an out-of-range
    # sentinel (== C), mirroring `label[ignore] = 0` + masked-select.
    if invisible_p is not None:
        ignore = invisible_p.reshape(B, HW) == 1.0
    elif ignore_label is not None:
        ignore = lab == ignore_label
    else:
        raise IOError("need invisible_p or ignore_label")
    lab = jnp.where(ignore, jnp.int32(C), lab)

    # ---- lane-dense tiling --------------------------------------------------
    isz = jnp.dtype(recon_label3.dtype).itemsize
    sub = 16 if isz == 2 else 8                       # bf16 sublane packing
    n_rows = -(-HW // _LANES)
    # Keep (double-buffered inputs + 2 resident f32 accumulators) under ~10 MiB
    # so the default scoped-VMEM limit is respected on every TPU generation.
    bytes_per_row = _LANES * (2 * (C * isz + 4) + 4 * 4)
    budget_rows = max(sub, (10 * 1024 * 1024) // bytes_per_row)
    row_tile = min(512, (budget_rows // sub) * sub)
    if n_rows <= row_tile:                            # small input: one tile
        row_tile = max(sub, -(-n_rows // sub) * sub)
    n_rows_pad = -(-n_rows // row_tile) * row_tile
    hw_pad = n_rows_pad * _LANES

    if hw_pad != HW:
        recon = jnp.pad(recon, ((0, 0), (0, 0), (0, hw_pad - HW)),
                        constant_values=1.0)
        lab = jnp.pad(lab, ((0, 0), (0, hw_pad - HW)),
                      constant_values=C)              # padded pixels -> ignored
    recon = recon.reshape(B, C, n_rows_pad, _LANES)
    lab = lab.reshape(B, 1, n_rows_pad, _LANES)

    n_tiles = n_rows_pad // row_tile

    sum_out, cnt_out = pl.pallas_call(
        _make_kernel(C),
        grid=(B, n_tiles),
        in_specs=[
            pl.BlockSpec((1, C, row_tile, _LANES), lambda b, t: (b, 0, t, 0)),
            pl.BlockSpec((1, 1, row_tile, _LANES), lambda b, t: (b, 0, t, 0)),
        ],
        out_specs=[
            pl.BlockSpec((1, row_tile, _LANES), lambda b, t: (b, 0, 0)),
            pl.BlockSpec((1, row_tile, _LANES), lambda b, t: (b, 0, 0)),
        ],
        out_shape=[
            jax.ShapeDtypeStruct((B, row_tile, _LANES), jnp.float32),
            jax.ShapeDtypeStruct((B, row_tile, _LANES), jnp.float32),
        ],
        compiler_params=pltpu.CompilerParams(
            dimension_semantics=("parallel", "arbitrary")),
    )(recon, lab)

    # Tiny final reduction + divide in plain JAX.
    total = jnp.sum(sum_out)
    count = jnp.sum(cnt_out)
    return (total / count) * loss_weight


def _reference(recon, label, invisible_p=None, loss_weight=1.0, ignore_label=255):
    lab = label[:, 0]
    if invisible_p is not None:
        ignore = invisible_p == 1.0
    else:
        ignore = lab == ignore_label
    lab_safe = jnp.where(ignore, 0, lab)
    gathered = jnp.take_along_axis(recon, lab_safe[:, None, :, :], axis=1)[:, 0]
    neglog = -jnp.log(gathered)
    valid = jnp.logical_not(ignore)
    return jnp.sum(jnp.where(valid, neglog, 0.0)) / jnp.sum(valid) * loss_weight


if __name__ == "__main__":
    key = jax.random.PRNGKey(0)
    k1, k2, k3, k4, k5 = jax.random.split(key, 5)

    B, C, H, W = 2, 4, 16, 16
    logits = jax.random.normal(k1, (B, C, H, W), dtype=jnp.float32)
    recon_label3 = jax.nn.softmax(logits, axis=1)     # positive "soft" labels
    label = jax.random.randint(k2, (B, 1, H, W), 0, C, dtype=jnp.int32)
    label = jnp.where(jax.random.bernoulli(k3, 0.2, (B, 1, H, W)),
                      jnp.int32(255), label)

    # ignore_label path
    out = loss_without_softmax(recon_label3, label,
                               loss_weight=1.0, ignore_label=255)
    out = jax.block_until_ready(out)
    ref = _reference(recon_label3, label, loss_weight=1.0, ignore_label=255)
    assert jnp.allclose(out, ref, rtol=1e-5, atol=1e-6), (out, ref)

    # invisible_p path
    invisible_p = jax.random.bernoulli(k4, 0.25, (B, H, W)).astype(jnp.float32)
    label2 = jax.random.randint(k5, (B, 1, H, W), 0, C, dtype=jnp.int32)
    out2 = loss_without_softmax(recon_label3, label2, invisible_p=invisible_p,
                                loss_weight=0.7, ignore_label=255)
    out2 = jax.block_until_ready(out2)
    ref2 = _reference(recon_label3, label2, invisible_p=invisible_p,
                      loss_weight=0.7, ignore_label=255)
    assert jnp.allclose(out2, ref2, rtol=1e-5, atol=1e-6), (out2, ref2)

    print("KERNEL_OK")
</pallas_src>

<mosaic_0001>
module attributes {stable_mosaic.version = 11 : i64} {
  func.func @kernel(%arg0: i32, %arg1: i32, %arg2: memref<1x4x8x128xf32, #tpu.memory_space<vmem>>, %arg3: memref<1x1x8x128xi32, #tpu.memory_space<vmem>>, %arg4: memref<1x8x128xf32, #tpu.memory_space<vmem>>, %arg5: memref<1x8x128xf32, #tpu.memory_space<vmem>>) attributes {dimension_semantics = [#tpu.dimension_semantics<parallel>, #tpu.dimension_semantics<arbitrary>], iteration_bounds = array<i64: 2, 1>, scalar_prefetch = 0 : i64, scratch_operands = 0 : i64, tpu.core_type = #tpu.core_type<tc>, window_params = [{transform_indices = @transform_0, window_bounds = array<i64: 1, 4, 8, 128>}, {transform_indices = @transform_1, window_bounds = array<i64: 1, 1, 8, 128>}, {transform_indices = @transform_2, window_bounds = array<i64: 1, 8, 128>}, {transform_indices = @transform_3, window_bounds = array<i64: 1, 8, 128>}]} {
    %c0_i32 = arith.constant 0 : i32
    %0 = arith.cmpi eq, %arg1, %c0_i32 : i32
    %1 = arith.extui %0 : i1 to i32
    %c0_i32_0 = arith.constant 0 : i32
    %2 = arith.cmpi ne, %1, %c0_i32_0 : i32
    scf.if %2 {
      %cst_33 = arith.constant 0.000000e+00 : f32
      %49 = vector.broadcast %cst_33 : f32 to vector<1x8x128xf32>
      %c0_34 = arith.constant 0 : index
      %c0_35 = arith.constant 0 : index
      %c0_36 = arith.constant 0 : index
      %50 = vector.load %arg4[%c0_34, %c0_35, %c0_36] : memref<1x8x128xf32, #tpu.memory_space<vmem>>, vector<1x8x128xf32>
      tpu.vector_store %arg4[%c0_34, %c0_35, %c0_36], %49 {strides = array<i32>} : memref<1x8x128xf32, #tpu.memory_space<vmem>>, vector<1x8x128xf32>,
      %cst_37 = arith.constant 0.000000e+00 : f32
      %51 = vector.broadcast %cst_37 : f32 to vector<1x8x128xf32>
      %c0_38 = arith.constant 0 : index
      %c0_39 = arith.constant 0 : index
      %c0_40 = arith.constant 0 : index
      %52 = vector.load %arg5[%c0_38, %c0_39, %c0_40] : memref<1x8x128xf32, #tpu.memory_space<vmem>>, vector<1x8x128xf32>
      tpu.vector_store %arg5[%c0_38, %c0_39, %c0_40], %51 {strides = array<i32>} : memref<1x8x128xf32, #tpu.memory_space<vmem>>, vector<1x8x128xf32>,
    } else {
    }
    %c0 = arith.constant 0 : index
    %c0_1 = arith.constant 0 : index
    %c0_2 = arith.constant 0 : index
    %c0_3 = arith.constant 0 : index
    %3 = vector.load %arg3[%c0, %c0_1, %c0_2, %c0_3] : memref<1x1x8x128xi32, #tpu.memory_space<vmem>>, vector<1x1x8x128xi32>
    %4 = vector.shape_cast %3 : vector<1x1x8x128xi32> to vector<8x128xi32>
    %c4_i32 = arith.constant 4 : i32
    %5 = vector.broadcast %c4_i32 : i32 to vector<8x128xi32>
    %6 = arith.cmpi ne, %4, %5 : vector<8x128xi32>
    %cst = arith.constant 0.000000e+00 : f32
    %7 = vector.broadcast %cst : f32 to vector<8x128xf32>
    %c0_i32_4 = arith.constant 0 : i32
    %8 = vector.broadcast %c0_i32_4 : i32 to vector<8x128xi32>
    %9 = arith.cmpi eq, %4, %8 : vector<8x128xi32>
    %c0_5 = arith.constant 0 : index
    %c0_6 = arith.constant 0 : index
    %c0_7 = arith.constant 0 : index
    %c0_8 = arith.constant 0 : index
    %10 = vector.load %arg2[%c0_5, %c0_6, %c0_7, %c0_8] : memref<1x4x8x128xf32, #tpu.memory_space<vmem>>, vector<1x1x8x128xf32>
    %11 = vector.shape_cast %10 : vector<1x1x8x128xf32> to vector<8x128xf32>
    %12 = arith.select %9, %11, %7 : vector<8x128xi1>, vector<8x128xf32>
    %c1_i32 = arith.constant 1 : i32
    %13 = vector.broadcast %c1_i32 : i32 to vector<8x128xi32>
    %14 = arith.cmpi eq, %4, %13 : vector<8x128xi32>
    %c0_9 = arith.constant 0 : index
    %c1 = arith.constant 1 : index
    %c0_10 = arith.constant 0 : index
    %c0_11 = arith.constant 0 : index
    %15 = vector.load %arg2[%c0_9, %c1, %c0_10, %c0_11] : memref<1x4x8x128xf32, #tpu.memory_space<vmem>>, vector<1x1x8x128xf32>
    %16 = vector.shape_cast %15 : vector<1x1x8x128xf32> to vector<8x128xf32>
    %17 = arith.select %14, %16, %12 : vector<8x128xi1>, vector<8x128xf32>
    %c2_i32 = arith.constant 2 : i32
    %18 = vector.broadcast %c2_i32 : i32 to vector<8x128xi32>
    %19 = arith.cmpi eq, %4, %18 : vector<8x128xi32>
    %c0_12 = arith.constant 0 : index
    %c2 = arith.constant 2 : index
    %c0_13 = arith.constant 0 : index
    %c0_14 = arith.constant 0 : index
    %20 = vector.load %arg2[%c0_12, %c2, %c0_13, %c0_14] : memref<1x4x8x128xf32, #tpu.memory_space<vmem>>, vector<1x1x8x128xf32>
    %21 = vector.shape_cast %20 : vector<1x1x8x128xf32> to vector<8x128xf32>
    %22 = arith.select %19, %21, %17 : vector<8x128xi1>, vector<8x128xf32>
    %c3_i32 = arith.constant 3 : i32
    %23 = vector.broadcast %c3_i32 : i32 to vector<8x128xi32>
    %24 = arith.cmpi eq, %4, %23 : vector<8x128xi32>
    %c0_15 = arith.constant 0 : index
    %c3 = arith.constant 3 : index
    %c0_16 = arith.constant 0 : index
    %c0_17 = arith.constant 0 : index
    %25 = vector.load %arg2[%c0_15, %c3, %c0_16, %c0_17] : memref<1x4x8x128xf32, #tpu.memory_space<vmem>>, vector<1x1x8x128xf32>
    %26 = vector.shape_cast %25 : vector<1x1x8x128xf32> to vector<8x128xf32>
    %27 = arith.select %24, %26, %22 : vector<8x128xi1>, vector<8x128xf32>
    %cst_18 = arith.constant 1.000000e+00 : f32
    %28 = vector.broadcast %cst_18 : f32 to vector<8x128xf32>
    %29 = arith.select %6, %27, %28 : vector<8x128xi1>, vector<8x128xf32>
    %c0_19 = arith.constant 0 : index
    %c0_20 = arith.constant 0 : index
    %c0_21 = arith.constant 0 : index
    %30 = vector.load %arg4[%c0_19, %c0_20, %c0_21] : memref<1x8x128xf32, #tpu.memory_space<vmem>>, vector<1x8x128xf32>
    %31 = vector.shape_cast %30 : vector<1x8x128xf32> to vector<8x128xf32>
    %32 = math.log %29 : vector<8x128xf32>
    %cst_22 = arith.constant 0.000000e+00 : f32
    %33 = vector.broadcast %cst_22 : f32 to vector<8x128xf32>
    %34 = arith.subf %33, %32 : vector<8x128xf32>
    %cst_23 = arith.constant 0.000000e+00 : f32
    %35 = vector.broadcast %cst_23 : f32 to vector<8x128xf32>
    %36 = arith.select %6, %34, %35 : vector<8x128xi1>, vector<8x128xf32>
    %37 = arith.addf %31, %36 : vector<8x128xf32>
    %c0_24 = arith.constant 0 : index
    %c0_25 = arith.constant 0 : index
    %c0_26 = arith.constant 0 : index
    %38 = vector.load %arg4[%c0_24, %c0_25, %c0_26] : memref<1x8x128xf32, #tpu.memory_space<vmem>>, vector<1x8x128xf32>
    %39 = vector.shape_cast %38 : vector<1x8x128xf32> to vector<8x128xf32>
    %40 = vector.shape_cast %37 : vector<8x128xf32> to vector<1x8x128xf32>
    tpu.vector_store %arg4[%c0_24, %c0_25, %c0_26], %40 {strides = array<i32>} : memref<1x8x128xf32, #tpu.memory_space<vmem>>, vector<1x8x128xf32>,
    %c0_27 = arith.constant 0 : index
    %c0_28 = arith.constant 0 : index
    %c0_29 = arith.constant 0 : index
    %41 = vector.load %arg5[%c0_27, %c0_28, %c0_29] : memref<1x8x128xf32, #tpu.memory_space<vmem>>, vector<1x8x128xf32>
    %42 = vector.shape_cast %41 : vector<1x8x128xf32> to vector<8x128xf32>
    %43 = arith.extui %6 : vector<8x128xi1> to vector<8x128xi32>
    %44 = arith.sitofp %43 : vector<8x128xi32> to vector<8x128xf32>
    %45 = arith.addf %42, %44 : vector<8x128xf32>
    %c0_30 = arith.constant 0 : index
    %c0_31 = arith.constant 0 : index
    %c0_32 = arith.constant 0 : index
    %46 = vector.load %arg5[%c0_30, %c0_31, %c0_32] : memref<1x8x128xf32, #tpu.memory_space<vmem>>, vector<1x8x128xf32>
    %47 = vector.shape_cast %46 : vector<1x8x128xf32> to vector<8x128xf32>
    %48 = vector.shape_cast %45 : vector<8x128xf32> to vector<1x8x128xf32>
    tpu.vector_store %arg5[%c0_30, %c0_31, %c0_32], %48 {strides = array<i32>} : memref<1x8x128xf32, #tpu.memory_space<vmem>>, vector<1x8x128xf32>,
    return
  }
  func.func @transform_0(%arg0: i32, %arg1: i32) -> (i32, i32, i32, i32) {
    %c0_i32 = arith.constant 0 : i32
    %c0_i32_0 = arith.constant 0 : i32
    %c0_i32_1 = arith.constant 0 : i32
    return %arg0, %c0_i32, %arg1, %c0_i32_0 : i32, i32, i32, i32
  }
  func.func @transform_1(%arg0: i32, %arg1: i32) -> (i32, i32, i32, i32) {
    %c0_i32 = arith.constant 0 : i32
    %c0_i32_0 = arith.constant 0 : i32
    %c0_i32_1 = arith.constant 0 : i32
    return %arg0, %c0_i32, %arg1, %c0_i32_0 : i32, i32, i32, i32
  }
  func.func @transform_2(%arg0: i32, %arg1: i32) -> (i32, i32, i32) {
    %c0_i32 = arith.constant 0 : i32
    %c0_i32_0 = arith.constant 0 : i32
    %c0_i32_1 = arith.constant 0 : i32
    return %arg0, %c0_i32, %c0_i32_0 : i32, i32, i32
  }
  func.func @transform_3(%arg0: i32, %arg1: i32) -> (i32, i32, i32) {
    %c0_i32 = arith.constant 0 : i32
    %c0_i32_0 = arith.constant 0 : i32
    %c0_i32_1 = arith.constant 0 : i32
    return %arg0, %c0_i32, %c0_i32_0 : i32, i32, i32
  }
}

</mosaic_0001>

<bundles_post_ra>
// kernel: tpu_custom_call.1
= control target key start
LH: loop header
LB: loop body
LE: loop exit
PB: predicated region body
PF: predicated region fallthrough
CT: control target
= control target key end

     0   :  { %9 = vsyncpa [#allocation3], 0  ;;  %s939_s0 = inlined_call_operand.hbm [shape: f32[2,4,8,128], index: 0, kind: input, shape index: {}]   ;;  %s940_s1 = inlined_call_operand.hbm [shape: s32[2,1,8,128], index: 1, kind: input, shape index: {}]   ;;  %s941_s2 = inlined_call_operand.hbm [shape: f32[2,8,128], index: 2, kind: output, shape index: {0}]   ;;  %s942_s3 = inlined_call_operand.hbm [shape: f32[2,8,128], index: 3, kind: output, shape index: {1}]  }
   0x1   :  { %11 = vsyncpa [#allocation3 + $0x1], 0 }
   0x2   :  { %12 = vsyncpa [#allocation6], 0 }
   0x3   :  { %14 = vsyncpa [#allocation6 + $0x1], 0 }
   0x4   :  { %15 = vsyncpa [#allocation4], 0 }
   0x5   :  { %17 = vsyncpa [#allocation4 + $0x1], 0 }
   0x6   :  { %18 = vsyncpa [#allocation9], 0 }
   0x7   :  { %20 = vsyncpa [#allocation9 + $0x1], 0  ;;  %s772_s12 = smov 0   ;;  %s774_s13 = smov 0  }
   0x8   :  { %s776_s14 = smov 0   ;;  %s778_s15 = smov 0  }
   0x9   :  { %s780_s16 = smov 0   ;;  %s782_s17 = smov 0  }
   0xa LB: > { %s467_s18 = sadd.s32 4294967295, %s747_s17   ;;  %s468_s19 = sadd.s32 4294967294, %s747_s17   ;;  %s747_s17 = sphi %s782_s17, %s26_s17   ;;  %s743_s16 = sphi %s780_s16, %s952_s16   ;;  %s739_s15 = sphi %s778_s15, %s951_s15   ;;  %s735_s14 = sphi %s776_s14, %s950_s14   ;;  %s731_s13 = sphi %s774_s13, %s949_s13   ;;  %s727_s12 = sphi %s772_s12, %s948_s12  }
   0xb   : > { %s38_s20 = sadd.s32 1, %s743_s16  ;;  %s47_s21 = sadd.s32 1, %s735_s14 }
   0xc   : > { %p40_p0 = scmp.ge.s32.totalorder %s38_s20, 2  ;;  %p54_p1 = scmp.ne.s32.totalorder %s735_s14, %s731_s13 }
   0xd   : > { %p55_p2 = scmp.eq.s32.totalorder %s747_s17, 0  ;;  %p60_p3 = scmp.ne.s32.totalorder %s731_s13, %s727_s12 }
   0xe   : > { %s954_s20 = smov (%p40_p0, %s38_s20), 0  ;;  %p61_p5 = scmp.eq.s32.totalorder %s467_s18, 0 }
   0xf   : > { %p813_p4 = por %p55_p2, %p54_p1  ;;  %s42_s23 = ssub.s32 %s743_s16, %s954_s20 }
  0x10   : > { %p112_p6 = scmp.eq.s32.totalorder %s467_s18, 1  ;;  %p45_p7 = scmp.eq.s32.totalorder %s42_s23, 0 }
  0x11   : > { %p819_p8 = por %p61_p5, %p60_p3  ;;  %p118_p10 = scmp.eq.s32.totalorder %s468_s19, 1 }
  0x12   : > { %p823_p9 = por %p112_p6, %p54_p1  ;;  %p470_p12 = scmp.ge.s32.totalorder %s747_s17, 2 }
  0x13   : > { %s828_s26 = scalar_select %p45_p7, %s735_s14, %s47_s21  }
  0x14   : > { %p830_p11 = por %p118_p10, %p60_p3  ;;  %p514_p13 = scmp.lt.s32.totalorder %s747_s17, 2 }
  0x15   : > { %s164_s28 = sand.u32 1, %s735_s14   ;;  %s491_s30 = sshll.u32 %s743_s16, 5 }
  0x16   : > { %s471_s29 = sshll.u32 %s164_s28, 5  ;;  %s174_s6 = scalar_lea.hbm %s939_s0, %s491_s30 }
  0x17   : > { %s168_s7 = scalar_lea.vmem [#allocation2], %s471_s29  ;;  %s175_s9 = sshll.u32 %s174_s6, 4  ;;  %s176_s9 = int_to_ptr.hbm [resolvable:$true] %s175_s9 }
  0x18   : > { %s177_s8 = sshll.u32 %s168_s7, 4  ;;  %p843_p0 = pnand %p514_p13, %p813_p4  ;;  %s178_s8 = int_to_ptr.vmem [resolvable:$true] %s177_s8 }
  0x19   : > { %p476_p1 = scmp.ge.s32.totalorder %s747_s17, 1  ;;  %s165_s11 = scalar_lea.sflag [#allocation3], %s164_s28 }
  0x1a   : > { %s749_s18 = smov 128   ;;  %s750_s19 = smov 8  }
  0x1b   : > { %503 = dma.hbm_to_vmem [thread:$0]  (!%p843_p0), %s176_s9, 512, %s178_s8, %s165_s11, %s749_s18, %s749_s18, %s750_s19  }
  0x1c   : > { %p205_p2 = scmp.lt.s32.totalorder %s747_s17, 3  ;;  %s474_s21 = sshll.u32 %s164_s28, 3 }
  0x1d   : > { %s475_s23 = sshll.u32 %s743_s16, 3  ;;  %s191_s4 = scalar_lea.vmem [#allocation5], %s474_s21 }
  0x1e   : > { %p206_p3 = pnand %p476_p1, %p205_p2  ;;  %s196_s22 = scalar_lea.hbm %s940_s1, %s475_s23 }
  0x1f   : > { %s200_s5 = sshll.u32 %s191_s4, 4  ;;  %s198_s6 = sshll.u32 %s196_s22, 4  ;;  %s201_s5 = int_to_ptr.vmem [resolvable:$true] %s200_s5  ;;  %s199_s6 = int_to_ptr.hbm [resolvable:$true] %s198_s6 }
  0x20   : > { %s188_s7 = scalar_lea.sflag [#allocation6], %s164_s28  ;;  %209 = sbr.rel (%p206_p3) target bundleno = 70 (0x46), region = 28 }
  0x21   : > { %506 = dma.hbm_to_vmem [thread:$0]  (!%p843_p0), %s199_s6, 128, %s201_s5, %s188_s7  }
  0x22   : > { %s858_s8 = sand.u32 (!%p206_p3), 1, %s731_s13  }
  0x23   : > { %s477_s9 = sshll.u32 (!%p206_p3), %s858_s8, 5  ;;  %s212_s11 = scalar_lea.sflag (!%p206_p3), [#allocation3], %s858_s8 }
  0x24   : > { %s215_s18 = scalar_lea.vmem (!%p206_p3), [#allocation2], %s477_s9 }
  0x25   : > { %710 = dma.done.wait (%p819_p8), %s212_s11, 512  }
  0x26   : > { %712 = vsyncadd (%p819_p8), %s212_s11, 4294966784  ;;  %s867_s28 = sshll.u32 %s858_s8, 3  ;;  %s222_s10 = scalar_lea.sflag [#allocation6], %s858_s8 }
  0x27   : > { %s225_s19 = scalar_lea.vmem [#allocation5], %s867_s28 }
  0x28   : > { %714 = dma.done.wait (%p819_p8), %s222_s10, 128  }
  0x29   : > { %716 = vsyncadd (%p819_p8), %s222_s10, 4294967168  ;;  %s487_s21 = sshll.u32 %s739_s15, 3  ;;  %v265_v0 = vld [vmem:[%s225_s19] sm:$0xff]  ;;  %s258_s22 = scalar_lea.vmem [#allocation8], %s867_s28  ;;  %v482_v3 = vld [vmem:[%s215_s18 + $0x10] sm:$0xff]  ;;  %v751_v6 = vmov 0.0  }
  0x2a   : > { %s325_s30 = scalar_lea.hbm %s942_s3, %s487_s21  ;;  %v268_v1 = vld [vmem:[%s215_s18] sm:$0xff]  ;;  %v481_v2 = vld [vmem:[%s215_s18 + $0x8] sm:$0xff]  ;;  %s882_s4 = sshll.u32 %s258_s22, 4  ;;  %vm266_vm0 = vcmp.ne.s32.totalorder %v265_v0, 4  ;;  %vm267_vm1 = vcmp.eq.s32.totalorder %v265_v0, 0  ;;  %vm270_vm2 = vcmp.eq.s32.totalorder %v265_v0, 1  ;;  %s328_s4 = int_to_ptr.vmem [resolvable:$true] %s882_s4 }
  0x2b   : > { %s329_s5 = sshll.u32 %s325_s30, 4  ;;  %vm274_vm3 = vcmp.eq.s32.totalorder %v265_v0, 2  ;;  %v269_v4 = vsel %vm267_vm1, %v268_v1, 0.0  ;;  %vm278_vm4 = vcmp.eq.s32.totalorder %v265_v0, 3  ;;  %v483_v5 = vld [vmem:[%s215_s18 + $0x18] sm:$0xff]  ;;  %v484_v7 = vsel %vm266_vm0, 1.0, %v751_v6  ;;  %s330_s5 = int_to_ptr.hbm [resolvable:$true] %s329_s5 }
  0x2c   : > { %v273_v8 = vsel %vm270_vm2, %v481_v2, %v269_v4  ;;  %294 = vst [vmem:[%s258_s22] sm:$0xff] %v484_v7  ;;  %s301_s24 = scalar_lea.sflag [#allocation9], %s858_s8  ;;  %s643_s6 = sshra.s32 %s330_s5, 4  ;;  %s644_s6 = int_to_ptr.hbm [resolvable:$true] %s643_s6 }
  0x2d   : > { %v277_v9 = vsel %vm274_vm3, %v482_v3, %v273_v8  ;;  %s645_s7 = scalar_lea.hbm %s644_s6, 8  ;;  %s649_s18 = scalar_lea.hbm %s942_s3, 16 }
  0x2e   : > { %v281_v10 = vsel %vm278_vm4, %v483_v5, %v277_v9  ;;  %p646_p4 = scmp.ne.s32.totalorder %s644_s6, %s645_s7  ;;  %p650_p7 = scmp.lt.s32.totalorder %s644_s6, %s942_s3 }
  0x2f   : > { %v282_v11 = vsel %vm266_vm0, %v281_v10, 1.0  ;;  %p651_p8 = scmp.lt.s32.totalorder %s649_s18, %s645_s7 }
  0x30   : > { %p647_p5 = pnand %p646_p4, %p823_p9 }
  0x31   : > { %p652_p10 = por %p651_p8, %p650_p7 }
  0x32   : > { %p648_p6 = pneg %p647_p5 }
  0x34   : > { %p653_p13 = pnand %p652_p10, %p648_p6 }
  0x36   : > { %656 = shalt.err (!%p653_p13)
}
  0x37   : > { %497 = dma.vmem_to_hbm [thread:$0]  (%p823_p9), %s328_s4, 128, %s330_s5, %s301_s24   ;;  %567 = vlog2.f32 %v282_v11 }
  0x38   : > { %s311_s30 = scalar_lea.hbm %s941_s2, %s487_s21  ;;  %s251_s22 = scalar_lea.vmem [#allocation7], %s867_s28 }
  0x39   : > { %s313_s6 = sshll.u32 %s251_s22, 4  ;;  %s315_s7 = sshll.u32 %s311_s30, 4  ;;  %s314_s6 = int_to_ptr.vmem [resolvable:$true] %s313_s6  ;;  %s316_s7 = int_to_ptr.hbm [resolvable:$true] %s315_s7 }
  0x3a   : > { %s296_s9 = scalar_lea.sflag [#allocation4], %s858_s8  ;;  %s671_s4 = sshra.s32 %s316_s7, 4  ;;  %s672_s4 = int_to_ptr.hbm [resolvable:$true] %s671_s4 }
  0x3b   : > { %s673_s5 = scalar_lea.hbm %s672_s4, 8  ;;  %s677_s24 = scalar_lea.hbm %s941_s2, 16 }
  0x3c   : > { %p674_p0 = scmp.ne.s32.totalorder %s672_s4, %s673_s5  ;;  %p678_p3 = scmp.lt.s32.totalorder %s672_s4, %s941_s2 }
  0x3d   : > { %v568_v12 = vpop.eup %567  ;;  %p679_p4 = scmp.lt.s32.totalorder %s677_s24, %s673_s5 }
  0x3e   : > { %v285_v13 = vmul.f32 0.6931472, %v568_v12  ;;  %p675_p1 = pnand %p674_p0, %p823_p9 }
  0x3f   : > { %p680_p5 = por %p679_p4, %p678_p3 }
  0x40   : > { %v286_v14 = vsub.f32 0.0, %v285_v13  ;;  %p676_p2 = pneg %p675_p1 }
  0x42   : > { %v287_v15 = vsel %vm266_vm0, %v286_v14, 0.0  ;;  %p681_p6 = pnand %p680_p5, %p676_p2 }
  0x43   : > { %289 = vst [vmem:[%s251_s22] sm:$0xff] %v287_v15 }
  0x44   : > { %684 = shalt.err (!%p681_p6)
}
  0x45   : > { %496 = dma.vmem_to_hbm [thread:$0]  (%p823_p9), %s314_s6, 128, %s316_s7, %s296_s9  }
  0x46 PF: > { %s341_s8 = sand.u32 1, %s727_s12   ;;  %p508_p7 = pnand %p470_p12, %p830_p11 }
  0x47   : > { %s342_s18 = scalar_lea.sflag [#allocation4], %s341_s8 }
  0x48   : > { %p509_p8 = pneg %p508_p7 }
  0x4a   : > { %718 = dma.done.wait (%p509_p8), %s342_s18, 128  }
  0x4b   : > { %720 = vsyncadd (%p509_p8), %s342_s18, 4294967168  ;;  %s352_s10 = scalar_lea.sflag [#allocation9], %s341_s8 }
  0x4c   : > { %722 = dma.done.wait (%p509_p8), %s352_s10, 128  }
  0x4d   : > { %724 = vsyncadd (%p509_p8), %s352_s10, 4294967168  ;;  %s26_s17 = sadd.s32 1, %s747_s17   ;;  %s948_s12 = smov %s731_s13 }
  0x4e   : > { %p23_p10 = scmp.ge.s32.totalorder %s26_s17, 4   ;;  %s949_s13 = smov %s735_s14 }
  0x4f   : > { %s950_s14 = smov %s828_s26  ;;  %s951_s15 = smov %s743_s16 }
  0x50   : > { %s952_s16 = smov %s954_s20  ;;  %25 = sbr.rel (!%p23_p10) target bundleno = 10 (0xa), region = 110 }
  0x55   :  { %358 = vsyncpa [#allocation3], 1 }
  0x56   :  { %360 = vsyncpa [#allocation3 + $0x1], 1 }
  0x57   :  { %361 = vsyncpa [#allocation6], 1 }
  0x58   :  { %363 = vsyncpa [#allocation6 + $0x1], 1 }
  0x59   :  { %364 = vsyncpa [#allocation4], 1 }
  0x5a   :  { %366 = vsyncpa [#allocation4 + $0x1], 1 }
  0x5b   :  { %367 = vsyncpa [#allocation9], 1 }
  0x5c   :  { %369 = vsyncpa [#allocation9 + $0x1], 1 }

</bundles_post_ra>
